<compile_context>
chip_gen: v7x
topology: tpu7x:2x2x1
jax: 0.10.0
libtpu: 0.0.40
codegen_flags: <defaults>
</compile_context>

<pallas_src>
import functools
import math

import jax
import jax.numpy as jnp
from jax.experimental import pallas as pl
from jax.experimental.pallas import tpu as pltpu


MULTIRES = 10
RETAIN_INPUT = True


def _swap_halves(v, dim):
    # Exchange the top/bottom `dim` sublanes of a (2*dim, tile) value.  Lowers
    # to an XLU sublane rotate and does not compete for VALU/EUP/store slots.
    return pltpu.roll(v, shift=dim, axis=0)


def _posenc_kernel(x_ref, o_ref, *, dim, multires, retain_input, out_dim):
    """x_ref: (dim, tile) channels-first input; o_ref: (tile, out_dim)."""
    x = x_ref[...].astype(jnp.float32)                     # (dim, tile)
    tile = x.shape[1]

    fast = (2 * dim == 8) and (multires % 2 == 0) and multires >= 2
    if fast:
        # Two frequencies per operand -> full 8-sublane f32 vregs for every
        # transcendental; power-of-two scaling is exact in f32, so arguments
        # match the reference bit-for-bit.
        x8 = jnp.concatenate([x, x * 2.0], axis=0)         # rows: [2^0 x ; 2^1 x]
        row = jax.lax.broadcasted_iota(jnp.int32, (8, tile), 0)
        top = row < dim

        sins, coss = [], []
        for j in range(multires // 2):
            ang = x8 if j == 0 else x8 * jnp.float32(4.0 ** j)
            sins.append(jnp.sin(ang))                      # [sin f_{2j} ; sin f_{2j+1}]
            coss.append(jnp.cos(ang))                      # [cos f_{2j} ; cos f_{2j+1}]

        groups = []
        if retain_input:
            # rows 0..7: [x ; sin f0]
            groups.append(jnp.where(top, x8, _swap_halves(sins[0], dim)))
            # rows 8k..8k+7: [cos f_{k-1} ; sin f_k]
            for k in range(1, multires):
                if k % 2 == 1:
                    j = (k - 1) // 2
                    groups.append(jnp.where(top, coss[j], sins[j]))
                else:
                    j = k // 2
                    groups.append(jnp.where(top,
                                            _swap_halves(coss[j - 1], dim),
                                            _swap_halves(sins[j], dim)))
            # rows 8*multires..: [cos f_{multires-1} ; <pad rows, sliced off>]
            groups.append(_swap_halves(coss[multires // 2 - 1], dim))
        else:
            # rows 8k..8k+7: [sin f_k ; cos f_k]
            for k in range(multires):
                j = k // 2
                if k % 2 == 0:
                    groups.append(jnp.where(top, sins[j],
                                            _swap_halves(coss[j], dim)))
                else:
                    groups.append(jnp.where(top, _swap_halves(sins[j], dim),
                                            coss[j]))
        slab = jnp.concatenate(groups, axis=0)             # (8*len(groups), tile)
    else:
        # Generic fallback (any dim / odd multires): per-frequency pieces,
        # padded to a sublane multiple before the transpose.
        pieces = [x] if retain_input else []
        for f in range(multires):
            ang = x if f == 0 else x * jnp.float32(2.0 ** f)
            pieces.append(jnp.sin(ang))
            pieces.append(jnp.cos(ang))
        pad_rows = (-out_dim) % 8
        if pad_rows:
            pieces.append(jnp.zeros((pad_rows, tile), jnp.float32))
        slab = jnp.concatenate(pieces, axis=0)

    # Channels-first -> channels-last for this tile (XLU; overlaps the output
    # DMA), then one lane-dense, fully contiguous store of the final layout.
    slab_t = jnp.transpose(slab, (1, 0))                   # (tile, rows)
    o_ref[...] = slab_t[:, :out_dim].astype(o_ref.dtype)


def positional_encoding(x, multires=MULTIRES, retain_input=RETAIN_INPUT,
                        tile_rays=8192, out_dtype=None):
    """Pallas equivalent of PositionalEncoding.forward.  x: (..., dim)."""
    *batch_shape, dim = x.shape
    out_dim = 2 * multires * dim + (dim if retain_input else 0)
    # Default matches the PyTorch module (same dtype as input).  Passing
    # out_dtype=jnp.bfloat16 halves the writeback (dominant cost, biggest win
    # on v5e) when the consumer tolerates it; note it also downcasts the
    # retained x columns.
    out_dtype = x.dtype if out_dtype is None else out_dtype

    n = math.prod(batch_shape)
    x2d = x.reshape(n, dim)

    # Channels-first input for the kernel (rays on the 128-lane axis).  This
    # transpose touches only 2*dim*4 B/ray, ~10% of the output writeback.
    xcf = x2d.T                                            # (dim, n)

    # Tile sizing: lane-aligned tiles, no array padding.  >= 2 grid steps
    # whenever possible so v7x's two TensorCores both get work.
    lanes = 128
    n_lane_tiles = pl.cdiv(n, lanes)
    grid = max(pl.cdiv(n, tile_rays), min(2, n_lane_tiles), 1)
    tile = pl.cdiv(n_lane_tiles, grid) * lanes
    grid = pl.cdiv(n, tile)

    kernel = functools.partial(
        _posenc_kernel, dim=dim, multires=multires,
        retain_input=retain_input, out_dim=out_dim)

    in_bytes = n * dim * x.dtype.itemsize
    out_bytes = n * out_dim * jnp.dtype(out_dtype).itemsize

    out = pl.pallas_call(
        kernel,
        out_shape=jax.ShapeDtypeStruct((n, out_dim), out_dtype),
        grid_spec=pltpu.PrefetchScalarGridSpec(
            num_scalar_prefetch=0,
            grid=(grid,),
            in_specs=[pl.BlockSpec((dim, tile), lambda i: (0, i))],
            out_specs=pl.BlockSpec((tile, out_dim), lambda i: (i, 0)),
        ),
        compiler_params=pltpu.CompilerParams(
            dimension_semantics=("parallel",),
            # Double-buffered (tile, out_dim) out block + in-kernel slab /
            # transpose temporaries ~= 16 MiB at tile=8192.  32 MiB fits the
            # scoped defaults on v6e/v7x and explicitly raises v5e's 16 MiB
            # default; keeps headroom on v7x's 64 MiB physical VMEM.
            vmem_limit_bytes=32 * 1024 * 1024,
        ),
        cost_estimate=pl.CostEstimate(
            flops=2 * n * dim * multires,
            transcendentals=2 * n * dim * multires,
            bytes_accessed=in_bytes + out_bytes,
        ),
    )(xcf)

    return out.reshape(*batch_shape, out_dim)


def _reference(x, multires=MULTIRES, retain_input=RETAIN_INPUT):
    # Pure-JAX replica of the PyTorch forward for verification.
    dim = x.shape[-1]
    freq = (2.0 ** jnp.arange(multires)).astype(x.dtype)   # (multires,)
    xf = x[..., None, :] * freq[:, None]                   # (..., multires, dim)
    enc = jnp.stack([jnp.sin(xf), jnp.cos(xf)], axis=-2)   # (..., multires, 2, dim)
    enc = enc.reshape(*x.shape[:-1], multires * 2 * dim)
    if retain_input:
        enc = jnp.concatenate([x, enc], axis=-1)
    return enc


if __name__ == "__main__":
    key = jax.random.PRNGKey(0)
    k1, k2 = jax.random.split(key)

    # Case 1: dim=4, 128 rays (single exact tile, fast fully-aligned path).
    x1 = jax.random.normal(k1, (2, 64, 4), dtype=jnp.float32)
    out1 = jax.block_until_ready(positional_encoding(x1))
    ref1 = _reference(x1)
    assert out1.shape == (2, 64, 4 + 2 * MULTIRES * 4), out1.shape
    assert jnp.allclose(out1, ref1, atol=1e-5, rtol=1e-5), "mismatch (case 1)"

    # Case 2: ray count not a multiple of the 128-lane tile (ragged last
    # block over 2 grid steps) -- exercises the masked edge DMA path.
    x2 = jax.random.normal(k2, (3, 50, 4), dtype=jnp.float32)
    out2 = jax.block_until_ready(positional_encoding(x2))
    ref2 = _reference(x2)
    assert out2.shape == (3, 50, 4 + 2 * MULTIRES * 4), out2.shape
    assert jnp.allclose(out2, ref2, atol=1e-5, rtol=1e-5), "mismatch (case 2)"

    print("KERNEL_OK")
</pallas_src>

<mosaic_0001>
module attributes {stable_mosaic.version = 11 : i64} {
  func.func @_posenc_kernel(%arg0: i32, %arg1: memref<4x128xf32, #tpu.memory_space<vmem>>, %arg2: memref<128x84xf32, #tpu.memory_space<vmem>>) attributes {dimension_semantics = [#tpu.dimension_semantics<parallel>], iteration_bounds = array<i64: 1>, scalar_prefetch = 0 : i64, scratch_operands = 0 : i64, tpu.core_type = #tpu.core_type<tc>, window_params = [{transform_indices = @transform_0, window_bounds = array<i64: 4, 128>}, {transform_indices = @transform_1, window_bounds = array<i64: 128, 84>}]} {
    %c0 = arith.constant 0 : index
    %c0_0 = arith.constant 0 : index
    %0 = vector.load %arg1[%c0, %c0_0] : memref<4x128xf32, #tpu.memory_space<vmem>>, vector<4x128xf32>
    %cst = arith.constant 2.000000e+00 : f32
    %1 = vector.broadcast %cst : f32 to vector<4x128xf32>
    %2 = arith.mulf %0, %1 : vector<4x128xf32>
    %3 = tpu.concatenate %0, %2 in 0 : vector<4x128xf32>, vector<4x128xf32> -> vector<8x128xf32>
    %4 = tpu.iota {dimensions = array<i32: 0>} : vector<8x128xi32>
    %c4_i32 = arith.constant 4 : i32
    %5 = vector.broadcast %c4_i32 : i32 to vector<8x128xi32>
    %6 = arith.cmpi slt, %4, %5 : vector<8x128xi32>
    %7 = math.sin %3 : vector<8x128xf32>
    %8 = math.cos %3 : vector<8x128xf32>
    %cst_1 = arith.constant 4.000000e+00 : f32
    %9 = vector.broadcast %cst_1 : f32 to vector<8x128xf32>
    %10 = arith.mulf %3, %9 : vector<8x128xf32>
    %11 = math.sin %10 : vector<8x128xf32>
    %12 = math.cos %10 : vector<8x128xf32>
    %cst_2 = arith.constant 1.600000e+01 : f32
    %13 = vector.broadcast %cst_2 : f32 to vector<8x128xf32>
    %14 = arith.mulf %3, %13 : vector<8x128xf32>
    %15 = math.sin %14 : vector<8x128xf32>
    %16 = math.cos %14 : vector<8x128xf32>
    %cst_3 = arith.constant 6.400000e+01 : f32
    %17 = vector.broadcast %cst_3 : f32 to vector<8x128xf32>
    %18 = arith.mulf %3, %17 : vector<8x128xf32>
    %19 = math.sin %18 : vector<8x128xf32>
    %20 = math.cos %18 : vector<8x128xf32>
    %cst_4 = arith.constant 2.560000e+02 : f32
    %21 = vector.broadcast %cst_4 : f32 to vector<8x128xf32>
    %22 = arith.mulf %3, %21 : vector<8x128xf32>
    %23 = math.sin %22 : vector<8x128xf32>
    %24 = math.cos %22 : vector<8x128xf32>
    %c4_i32_5 = arith.constant 4 : i32
    %25 = tpu.dynamic_rotate %7 by %c4_i32_5 dim 0 : vector<8x128xf32>, i32 -> vector<8x128xf32>
    %26 = arith.select %6, %3, %25 : vector<8x128xi1>, vector<8x128xf32>
    %27 = arith.select %6, %8, %7 : vector<8x128xi1>, vector<8x128xf32>
    %c4_i32_6 = arith.constant 4 : i32
    %28 = tpu.dynamic_rotate %8 by %c4_i32_6 dim 0 : vector<8x128xf32>, i32 -> vector<8x128xf32>
    %c4_i32_7 = arith.constant 4 : i32
    %29 = tpu.dynamic_rotate %11 by %c4_i32_7 dim 0 : vector<8x128xf32>, i32 -> vector<8x128xf32>
    %30 = arith.select %6, %28, %29 : vector<8x128xi1>, vector<8x128xf32>
    %31 = arith.select %6, %12, %11 : vector<8x128xi1>, vector<8x128xf32>
    %c4_i32_8 = arith.constant 4 : i32
    %32 = tpu.dynamic_rotate %12 by %c4_i32_8 dim 0 : vector<8x128xf32>, i32 -> vector<8x128xf32>
    %c4_i32_9 = arith.constant 4 : i32
    %33 = tpu.dynamic_rotate %15 by %c4_i32_9 dim 0 : vector<8x128xf32>, i32 -> vector<8x128xf32>
    %34 = arith.select %6, %32, %33 : vector<8x128xi1>, vector<8x128xf32>
    %35 = arith.select %6, %16, %15 : vector<8x128xi1>, vector<8x128xf32>
    %c4_i32_10 = arith.constant 4 : i32
    %36 = tpu.dynamic_rotate %16 by %c4_i32_10 dim 0 : vector<8x128xf32>, i32 -> vector<8x128xf32>
    %c4_i32_11 = arith.constant 4 : i32
    %37 = tpu.dynamic_rotate %19 by %c4_i32_11 dim 0 : vector<8x128xf32>, i32 -> vector<8x128xf32>
    %38 = arith.select %6, %36, %37 : vector<8x128xi1>, vector<8x128xf32>
    %39 = arith.select %6, %20, %19 : vector<8x128xi1>, vector<8x128xf32>
    %c4_i32_12 = arith.constant 4 : i32
    %40 = tpu.dynamic_rotate %20 by %c4_i32_12 dim 0 : vector<8x128xf32>, i32 -> vector<8x128xf32>
    %c4_i32_13 = arith.constant 4 : i32
    %41 = tpu.dynamic_rotate %23 by %c4_i32_13 dim 0 : vector<8x128xf32>, i32 -> vector<8x128xf32>
    %42 = arith.select %6, %40, %41 : vector<8x128xi1>, vector<8x128xf32>
    %43 = arith.select %6, %24, %23 : vector<8x128xi1>, vector<8x128xf32>
    %c4_i32_14 = arith.constant 4 : i32
    %44 = tpu.dynamic_rotate %24 by %c4_i32_14 dim 0 : vector<8x128xf32>, i32 -> vector<8x128xf32>
    %45 = tpu.concatenate %26, %27, %30, %31, %34, %35, %38, %39, %42, %43, %44 in 0 : vector<8x128xf32>, vector<8x128xf32>, vector<8x128xf32>, vector<8x128xf32>, vector<8x128xf32>, vector<8x128xf32>, vector<8x128xf32>, vector<8x128xf32>, vector<8x128xf32>, vector<8x128xf32>, vector<8x128xf32> -> vector<88x128xf32>
    %46 = tpu.transpose %45, [1, 0] : vector<88x128xf32> -> vector<128x88xf32>
    %47 = vector.extract_strided_slice %46 {offsets = [0, 0], sizes = [128, 84], strides = [1, 1]} : vector<128x88xf32> to vector<128x84xf32>
    %c0_15 = arith.constant 0 : index
    %c0_16 = arith.constant 0 : index
    %48 = vector.load %arg2[%c0_15, %c0_16] : memref<128x84xf32, #tpu.memory_space<vmem>>, vector<128x84xf32>
    tpu.vector_store %arg2[%c0_15, %c0_16], %47 {strides = array<i32>} : memref<128x84xf32, #tpu.memory_space<vmem>>, vector<128x84xf32>,
    return
  }
  func.func @transform_0(%arg0: i32) -> (i32, i32) {
    %c0_i32 = arith.constant 0 : i32
    %c0_i32_0 = arith.constant 0 : i32
    return %c0_i32, %arg0 : i32, i32
  }
  func.func @transform_1(%arg0: i32) -> (i32, i32) {
    %c0_i32 = arith.constant 0 : i32
    %c0_i32_0 = arith.constant 0 : i32
    return %arg0, %c0_i32 : i32, i32
  }
}

</mosaic_0001>

<bundles_post_ra>
// kernel: tpu_custom_call.1
= control target key start
LH: loop header
LB: loop body
LE: loop exit
PB: predicated region body
PF: predicated region fallthrough
CT: control target
= control target key end

     0   :  { %6 = vsyncpa [#allocation3], 0  ;;  %s1255_s6 = smov [#allocation2]   ;;  %s1800_s0 = inlined_call_operand.hbm [shape: f32[4,128], index: 0, kind: input, shape index: {}]   ;;  %s1801_s1 = inlined_call_operand.vmem [shape: f32[128,84], index: 1, kind: output, shape index: {}]  }
   0x1   :  { %s13_s7 = sshll.u32 %s1255_s6, 4  ;;  %s1231_s10 = scalar_lea.hbm %s1800_s0, 64  ;;  %s14_s7 = int_to_ptr.vmem [resolvable:$true] %s13_s7 }
   0x2   :  { %p1232_p0 = scmp.ne.s32.totalorder %s1800_s0, %s1231_s10  ;;  %p1235_p1 = scmp.lt.u32.totalorder %s1231_s10, %s1800_s0 }
   0x4   :  { %p1237_p2 = pnand %p1235_p1, %p1232_p0 }
   0x6   :  { %1240 = shalt.err (!%p1237_p2)
}
   0x7   :  { %s1241_s15 = scalar_lea.vmem %s14_s7, 64  ;;  %p1246_p4 = scmp.lt.s32.totalorder %s14_s7, %s14_s7 }
   0x8   :  { %p1242_p3 = scmp.ne.s32.totalorder %s14_s7, %s1241_s15  ;;  %p1247_p5 = scmp.lt.s32.totalorder %s1241_s15, %s1241_s15 }
   0xa   :  { %p1248_p6 = por %p1247_p5, %p1246_p4 }
   0xc   :  { %p1249_p7 = pnand %p1248_p6, %p1242_p3 }
   0xe   :  { %1252 = shalt.err (!%p1249_p7)
}
   0xf   :  { %16 = dma.hbm_to_vmem [thread:$0]  %s1800_s0, 64, %s14_s7, [#allocation3]  }
  0x10   :  { %1253 = dma.done.wait [#allocation3], 64  }
  0x11   :  { %1254 = vsyncadd [#allocation3], 4294967232  ;;  %v20_v0 = vld [vmem:[#allocation2] sm:$0xf]  ;;  %vm25_vm0 = vcmask 1043456  }
  0x12   :  { %v21_v1 = vmul.f32 2.0, %v20_v0  ;;  %v1256_v29 = vmov 683565275   ;;  %v1257_v31 = vmov 2475754826  }
  0x13   :  { %v1258_v33 = vmov 2131351028   ;;  %v1259_v35 = vmov 2102212464   ;;  %v1260_v37 = vmov 920167782  }
  0x14   :  { %v23_v2 = vrot.slane %v21_v1, 4  ;;  %v1261_v44 = vmov 1326507024  }
  0x16   :  { %v1284_v3 = vsel %vm25_vm0, %v20_v0, %v23_v2 }
  0x17   :  { %v30_v4 = vand.u32 2147483647, %v1284_v3  ;;  %v33_v5 = vand.u32 2139095040, %v1284_v3  ;;  %v1289_v6 = vmul.f32 4.0, %v1284_v3  ;;  %v1292_v7 = vmul.f32 16.0, %v1284_v3 }
  0x18   :  { %vm32_vm14 = vcmp.lt.s32.totalorder %v1284_v3, 0 }
  0x19   :  { %v34_v8 = vshrl.u32 %v33_v5, 23  ;;  %v37_v9 = vand.u32 8388607, %v30_v4  ;;  %v238_v10 = vand.u32 2147483647, %v1289_v6  ;;  %v241_v11 = vand.u32 2139095040, %v1289_v6 }
  0x1a   :  { %v449_v15 = vand.u32 2139095040, %v1292_v7  ;;  %vm1388_vm15 = vcmp.le.f32.partialorder %v30_v4, 0.7853982 }
  0x1b   :  { %v1143_v12 = vadd.s32 4294967169, %v34_v8  ;;  %v242_v13 = vshrl.u32 %v241_v11, 23  ;;  %v245_v14 = vand.u32 8388607, %v238_v10  ;;  %v38_v17 = vor.u32 8388608, %v37_v9 }
  0x1c   :  { %v450_v20 = vshrl.u32 %v449_v15, 23 }
  0x1d   :  { %v40_v16 = vadd.s32 1, %v1143_v12  ;;  %v1151_v18 = vadd.s32 4294967169, %v242_v13  ;;  %v246_v19 = vor.u32 8388608, %v245_v14  ;;  %v1301_v25 = vshll.u32 %v38_v17, 8 }
  0x1e   :  { %v1305_v27 = vadd.s32 4294967169, %v450_v20 }
  0x1f   :  { %vm41_vm1 = vcmp.gt.s32.totalorder %v40_v16, 0  ;;  %v248_v22 = vadd.s32 1, %v1151_v18  ;;  %v1303_v26 = vshll.u32 %v246_v19, 8 }
  0x20   :  { %v42_v21 = vsel %vm41_vm1, %v40_v16, 0  ;;  %vm240_vm1 = vcmp.lt.s32.totalorder %v1289_v6, 0 }
  0x21   :  { %v43_v23 = vshrl.u32 %v42_v21, 5  ;;  %v44_v24 = vand.u32 31, %v42_v21  ;;  %vm249_vm2 = vcmp.gt.s32.totalorder %v248_v22, 0 }
  0x22   :  { %v250_v49 = vsel %vm249_vm2, %v248_v22, 0 }
  0x23   :  { %v45_v28 = vsub.s32 32, %v44_v24  ;;  %v47_v30 = vshll.u32 %v1256_v29, %v44_v24  ;;  %v50_v32 = vshll.u32 %v1257_v31, %v44_v24  ;;  %v53_v34 = vshll.u32 %v1258_v33, %v44_v24 }
  0x24   :  { %v56_v36 = vshll.u32 %v1259_v35, %v44_v24  ;;  %v59_v38 = vshll.u32 %v1260_v37, %v44_v24  ;;  %vm62_vm3 = vcmp.lt.s32.totalorder %v43_v23, 1  ;;  %vm63_vm4 = vcmp.lt.s32.totalorder %v43_v23, 2 }
  0x25   :  { %v46_v39 = vshrl.u32 %v1256_v29, %v45_v28  ;;  %v48_v40 = vshrl.u32 %v1257_v31, %v45_v28  ;;  %v51_v41 = vshrl.u32 %v1258_v33, %v45_v28  ;;  %v54_v42 = vshrl.u32 %v1259_v35, %v45_v28 }
  0x26   :  { %v57_v43 = vshrl.u32 %v1260_v37, %v45_v28  ;;  %v60_v45 = vshrl.u32 %v1261_v44, %v45_v28  ;;  %vm64_vm5 = vcmp.lt.s32.totalorder %v43_v23, 3  ;;  %vm65_vm6 = vcmp.lt.s32.totalorder %v43_v23, 4 }
  0x27   :  { %v49_v46 = vor.u32 %v48_v40, %v47_v30  ;;  %v52_v47 = vor.u32 %v51_v41, %v50_v32  ;;  %v55_v48 = vor.u32 %v54_v42, %v53_v34  ;;  %v251_v52 = vshrl.u32 %v250_v49, 5 }
  0x28   :  { %v58_v50 = vor.u32 %v57_v43, %v56_v36  ;;  %v61_v51 = vor.u32 %v60_v45, %v59_v38  ;;  %v252_v53 = vand.u32 31, %v250_v49  ;;  %v456_v32 = vadd.s32 1, %v1305_v27 }
  0x29   :  { %v66_v54 = vsel %vm62_vm3, %v46_v39, %v49_v46  ;;  %v67_v55 = vsel %vm65_vm6, %v55_v48, 2102212464  ;;  %v70_v56 = vsel %vm62_vm3, %v49_v46, %v52_v47  ;;  %v74_v57 = vsel %vm62_vm3, %v52_v47, %v55_v48 }
  0x2a   :  { %v68_v58 = vsel %vm64_vm5, %v52_v47, %v67_v55  ;;  %v71_v59 = vsel %vm65_vm6, %v58_v50, 920167782  ;;  %v75_v60 = vsel %vm65_vm6, %v61_v51, 1326507024  ;;  %v253_v61 = vsub.s32 32, %v252_v53 }
  0x2b   :  { %v69_v62 = vsel %vm63_vm4, %v66_v54, %v68_v58  ;;  %v72_v63 = vsel %vm64_vm5, %v55_v48, %v71_v59  ;;  %v76_v0 = vsel %vm64_vm5, %v58_v50, %v75_v60  ;;  %v255_v1 = vshll.u32 %v1256_v29, %v252_v53 }
  0x2c   :  { %v73_v2 = vsel %vm63_vm4, %v70_v56, %v72_v63  ;;  %v77_v5 = vsel %vm63_vm4, %v74_v57, %v76_v0  ;;  %v85_v8 = vmul.u32 %v1301_v25, %v69_v62  ;;  %v254_v9 = vshrl.u32 %v1256_v29, %v253_v61 }
  0x2d   :  { %v1332_v11 = vmul.u32.u64.low %v1301_v25, %v77_v5  ;;  %v1333_v12 = vmul.u32.u64.high %v1301_v25, %v77_v5, %v1332_v11  ;;  %v1336_v13 = vmul.u32.u64.low %v1301_v25, %v73_v2  ;;  %v1337_v14 = vmul.u32.u64.high %v1301_v25, %v73_v2, %v1336_v13 }
  0x2e   :  { %v256_v15 = vshrl.u32 %v1257_v31, %v253_v61  ;;  %v258_v16 = vshll.u32 %v1257_v31, %v252_v53  ;;  %v259_v17 = vshrl.u32 %v1258_v33, %v253_v61  ;;  %v261_v18 = vshll.u32 %v1258_v33, %v252_v53 }
  0x2f   :  { %v262_v19 = vshrl.u32 %v1259_v35, %v253_v61  ;;  %v264_v20 = vshll.u32 %v1259_v35, %v252_v53  ;;  %v265_v21 = vshrl.u32 %v1260_v37, %v253_v61  ;;  %v267_v22 = vshll.u32 %v1260_v37, %v252_v53 }
  0x30   :  { %v257_v23 = vor.u32 %v256_v15, %v255_v1  ;;  %v260_v24 = vor.u32 %v259_v17, %v258_v16  ;;  %v268_v25 = vshrl.u32 %v1261_v44, %v253_v61  ;;  %vm270_vm7 = vcmp.lt.s32.totalorder %v251_v52, 1 }
  0x31   :  { %vm87_vm8 = vc.u32 %v1333_v12, %v1336_v13  ;;  %v88_v28 = vadd.s32 1, %v1337_v14  ;;  %v263_v30 = vor.u32 %v262_v19, %v261_v18  ;;  %v266_v34 = vor.u32 %v265_v21, %v264_v20 }
  0x32   :  { %v269_v36 = vor.u32 %v268_v25, %v267_v22  ;;  %vm271_vm9 = vcmp.lt.s32.totalorder %v251_v52, 2  ;;  %vm272_vm10 = vcmp.lt.s32.totalorder %v251_v52, 3  ;;  %vm273_vm11 = vcmp.lt.s32.totalorder %v251_v52, 4 }
  0x33   :  { %v89_v38 = vsel %vm87_vm8, %v88_v28, %v1337_v14  ;;  %v274_v39 = vsel %vm270_vm7, %v254_v9, %v257_v23  ;;  %v278_v40 = vsel %vm270_vm7, %v257_v23, %v260_v24  ;;  %v275_v42 = vsel %vm273_vm11, %v263_v30, 2102212464 }
  0x34   :  { %v90_v41 = vadd.s32 %v89_v38, %v85_v8  ;;  %v279_v43 = vsel %vm273_vm11, %v266_v34, 920167782  ;;  %v282_v45 = vsel %vm270_vm7, %v260_v24, %v263_v30  ;;  %v276_v46 = vsel %vm272_vm10, %v260_v24, %v275_v42 }
  0x35   :  { %v280_v47 = vsel %vm272_vm10, %v263_v30, %v279_v43  ;;  %v283_v48 = vsel %vm273_vm11, %v269_v36, 1326507024  ;;  %vm457_vm12 = vcmp.gt.s32.totalorder %v456_v32, 0  ;;  %v446_v51 = vand.u32 2147483647, %v1292_v7 }
  0x36   :  { %v91_v27 = vadd.s32 536870912, %v90_v41  ;;  %v281_v49 = vsel %vm271_vm9, %v278_v40, %v280_v47  ;;  %v284_v50 = vsel %vm272_vm10, %v266_v34, %v283_v48  ;;  %v277_v53 = vsel %vm271_vm9, %v274_v39, %v276_v46 }
  0x37   :  { %v285_v54 = vsel %vm271_vm9, %v282_v45, %v284_v50  ;;  %v1362_v55 = vmul.u32.u64.low %v1303_v26, %v281_v49  ;;  %v1363_v56 = vmul.u32.u64.high %v1303_v26, %v281_v49, %v1362_v55  ;;  %v458_v60 = vsel %vm457_vm12, %v456_v32, 0 }
  0x38   :  { %v92_v57 = vshrl.u32 %v91_v27, 30  ;;  %v1366_v58 = vmul.u32.u64.low %v1303_v26, %v285_v54  ;;  %v1367_v59 = vmul.u32.u64.high %v1303_v26, %v285_v54, %v1366_v58  ;;  %v460_v61 = vand.u32 31, %v458_v60 }
  0x39   :  { %v293_v63 = vmul.u32 %v1303_v26, %v277_v53  ;;  %v296_v0 = vadd.s32 1, %v1363_v56  ;;  %v453_v52 = vand.u32 8388607, %v446_v51  ;;  %v1377_v2 = vmul.f32 64.0, %v1284_v3 }
  0x3a   :  { %v93_v62 = vshll.u32 %v92_v57, 30  ;;  %vm295_vm13 = vc.u32 %v1367_v59, %v1362_v55  ;;  %v116_v5 = vsub.s32 4, %v92_v57  ;;  %v461_v9 = vsub.s32 32, %v460_v61 }
  0x3b   :  { %v297_v8 = vsel %vm295_vm13, %v296_v0, %v1363_v56  ;;  %v27_v11 = vlaneseq  ;;  %v454_v15 = vor.u32 8388608, %v453_v52  ;;  %v654_v16 = vand.u32 2147483647, %v1377_v2 }
  0x3c   :  { %v1373_v1 = vsub.s32 %v90_v41, %v93_v62  ;;  %v298_v26 = vadd.s32 %v297_v8, %v293_v63  ;;  %v1384_v17 = vmul.f32 256.0, %v1284_v3  ;;  %v463_v20 = vshll.u32 %v1256_v29, %v460_v61 }
  0x3d   :  { %v657_v21 = vand.u32 2139095040, %v1377_v2  ;;  %v117_v22 = vsel %vm32_vm14, %v116_v5, %v92_v57  ;;  %v464_v24 = vshrl.u32 %v1257_v31, %v461_v9  ;;  %v466_v25 = vshll.u32 %v1257_v31, %v460_v61 }
  0x3e   :  { %v96_v14 = vsub.s32 0, %v1373_v1  ;;  %v299_v23 = vadd.s32 536870912, %v298_v26  ;;  %v467_v4 = vshrl.u32 %v1258_v33, %v461_v9  ;;  %v469_v30 = vshll.u32 %v1258_v33, %v460_v61 }
  0x3f   :  { %v470_v32 = vshrl.u32 %v1259_v35, %v461_v9  ;;  %v86_v34 = vadd.s32 %v1336_v13, %v1333_v12  ;;  %v1404_v38 = vshll.u32 %v454_v15, 8  ;;  %v1408_v39 = vand.u32 8388607, %v654_v16 }
  0x40   :  { %v1144_v19 = vmin.u32 %v96_v14, %v1373_v1  ;;  %v300_v36 = vshrl.u32 %v299_v23, 30  ;;  %v459_v41 = vshrl.u32 %v458_v60, 5  ;;  %v472_v42 = vshll.u32 %v1259_v35, %v460_v61 }
  0x41   :  { %v473_v43 = vshrl.u32 %v1260_v37, %v461_v9  ;;  %v119_v45 = vsel %vm1388_vm15, 0, %v117_v22  ;;  %v1415_v46 = vadd.s32 %v1362_v55, %v1367_v59  ;;  %v658_v13 = vshrl.u32 %v657_v21, 23 }
  0x42   :  { %v98_v28 = vclz %v1144_v19  ;;  %v301_v12 = vshll.u32 %v300_v36, 30  ;;  %v465_v47 = vor.u32 %v464_v24, %v463_v20  ;;  %v468_v48 = vor.u32 %v467_v4, %v466_v25 }
  0x43   :  { %v471_v27 = vor.u32 %v470_v32, %v469_v30  ;;  %v475_v53 = vshll.u32 %v1260_v37, %v460_v61  ;;  %v476_v54 = vshrl.u32 %v1261_v44, %v461_v9  ;;  %v474_v58 = vor.u32 %v473_v43, %v472_v42 }
  0x44   :  { %v1145_v40 = vadd.s32 4294967294, %v98_v28  ;;  %v1418_v50 = vsub.s32 %v298_v26, %v301_v12  ;;  %v462_v60 = vshrl.u32 %v1256_v29, %v461_v9  ;;  %vm478_vm2 = vcmp.lt.s32.totalorder %v459_v41, 1 }
  0x45   :  { %vm481_vm3 = vcmp.lt.s32.totalorder %v459_v41, 4  ;;  %vm479_vm4 = vcmp.lt.s32.totalorder %v459_v41, 2  ;;  %v324_v52 = vsub.s32 4, %v300_v36  ;;  %v477_v5 = vor.u32 %v476_v54, %v475_v53 }
  0x46   :  { %vm1146_vm0 = vcmp.lt.s32.totalorder %v1145_v40, 0  ;;  %v304_v59 = vsub.s32 0, %v1418_v50  ;;  %v483_v0 = vsel %vm481_vm3, %v471_v27, 2102212464  ;;  %vm480_vm5 = vcmp.lt.s32.totalorder %v459_v41, 3 }
  0x47   :  { %v101_v49 = vsel %vm1146_vm0, 0, %v1145_v40  ;;  %vm1429_vm6 = vcmp.le.f32.partialorder %v238_v10, 0.7853982  ;;  %v486_v9 = vsel %vm478_vm2, %v465_v47, %v468_v48  ;;  %v487_v26 = vsel %vm481_vm3, %v474_v58, 920167782 }
  0x48   :  { %v102_v56 = vsub.s32 32, %v101_v49  ;;  %v103_v57 = vshll.u32 %v1373_v1, %v101_v49  ;;  %v106_v55 = vsub.s32 4294967266, %v101_v49  ;;  %v1152_v61 = vmin.u32 %v304_v59, %v1418_v50 }
  0x49   :  { %v123_v15 = vadd.s32 3, %v119_v45  ;;  %v482_v20 = vsel %vm478_vm2, %v462_v60, %v465_v47  ;;  %v484_v21 = vsel %vm480_vm5, %v468_v48, %v483_v0  ;;  %v488_v24 = vsel %vm480_vm5, %v471_v27, %v487_v26 }
  0x4a   :  { %v104_v62 = vshrl.u32 %v86_v34, %v102_v56  ;;  %v107_v63 = vadd.s32 127, %v106_v55  ;;  %v306_v19 = vclz %v1152_v61  ;;  %v490_v25 = vsel %vm478_vm2, %v468_v48, %v471_v27 }
  0x4b   :  { %v325_v28 = vsel %vm240_vm1, %v324_v52, %v300_v36  ;;  %v489_v4 = vsel %vm479_vm4, %v486_v9, %v488_v24  ;;  %v491_v30 = vsel %vm481_vm3, %v477_v5, 1326507024  ;;  %v485_v43 = vsel %vm479_vm4, %v482_v20, %v484_v21 }
  0x4c   :  { %v105_v8 = vor.u32 %v104_v62, %v103_v57  ;;  %v108_v1 = vshll.u32 %v107_v63, 23  ;;  %v1153_v10 = vadd.s32 4294967294, %v306_v19  ;;  %v492_v34 = vsel %vm480_vm5, %v474_v58, %v491_v30 }
  0x4d   :  { %v1445_v40 = vmul.u32.u64.low %v1404_v38, %v489_v4  ;;  %v1446_v42 = vmul.u32.u64.high %v1404_v38, %v489_v4, %v1445_v40  ;;  %v493_v12 = vsel %vm479_vm4, %v490_v25, %v492_v34  ;;  %v1167_v47 = vadd.s32 4294967169, %v658_v13 }
  0x4e   :  { %v109_v22 = vor.u32 4788187, %v108_v1  ;;  %v112_v23 = vcvt.s32.f32 %v105_v8  ;;  %vm1154_vm7 = vcmp.lt.s32.totalorder %v1153_v10, 0  ;;  %v1455_v58 = vand.u32 3, %v119_v45 }
  0x4f   :  { %v309_v27 = vsel %vm1154_vm7, 0, %v1153_v10  ;;  %v1451_v36 = vmul.u32.u64.low %v1404_v38, %v493_v12  ;;  %v1452_v49 = vmul.u32.u64.high %v1404_v38, %v493_v12, %v1451_v36  ;;  %v664_v57 = vadd.s32 1, %v1167_v47 }
  0x50   :  { %v110_v32 = vand.u32 2147483647, %v109_v22  ;;  %v310_v53 = vsub.s32 32, %v309_v27  ;;  %v311_v54 = vshll.u32 %v1418_v50, %v309_v27  ;;  %v314_v56 = vsub.s32 4294967266, %v309_v27 }
  0x51   :  { %v501_v59 = vmul.u32 %v1404_v38, %v485_v43  ;;  %v504_v41 = vadd.s32 1, %v1446_v42  ;;  %v327_v62 = vsel %vm1429_vm6, 0, %v325_v28  ;;  %vm665_vm8 = vcmp.gt.s32.totalorder %v664_v57, 0 }
  0x52   :  { %v113_v48 = vmul.f32 %v112_v23, %v110_v32  ;;  %v312_v13 = vshrl.u32 %v1415_v46, %v310_v53  ;;  %v315_v60 = vadd.s32 127, %v314_v56  ;;  %v1464_v50 = vand.u32 3, %v123_v15 }
  0x53   :  { %vm503_vm9 = vc.u32 %v1452_v49, %v1445_v40  ;;  %v666_v45 = vsel %vm665_vm8, %v664_v57, 0  ;;  %v331_v52 = vadd.s32 3, %v327_v62  ;;  %v662_v26 = vor.u32 8388608, %v1408_v39 }
  0x54   :  { %v114_v55 = vxor.u32 2147483648, %v113_v48  ;;  %v313_v0 = vor.u32 %v312_v13, %v311_v54  ;;  %v316_v61 = vshll.u32 %v315_v60, 23  ;;  %v505_v46 = vsel %vm503_vm9, %v504_v41, %v1446_v42 }
  0x55   :  { %v506_v5 = vadd.s32 %v505_v46, %v501_v59  ;;  %v668_v8 = vand.u32 31, %v666_v45  ;;  %v1473_v15 = vshrl.u32 %v27_v11, 7  ;;  %vm126_vm10 = vcmp.eq.s32.totalorder %v1464_v50, 0 }
  0x56   :  { %v115_v63 = vsel %vm32_vm14, %v114_v55, %v113_v48  ;;  %v317_v1 = vor.u32 4788187, %v316_v61  ;;  %v320_v9 = vcvt.s32.f32 %v313_v0  ;;  %vm129_vm11 = vcmp.eq.s32.totalorder %v1464_v50, 2 }
  0x57   :  { %v118_v38 = vsel %vm1388_vm15, %v1284_v3, %v115_v63  ;;  %v507_v19 = vadd.s32 536870912, %v506_v5  ;;  %v669_v20 = vsub.s32 32, %v668_v8  ;;  %vm229_vm12 = vcmp.eq.s32.totalorder %v1455_v58, 0 }
  0x58   :  { %1211 = vcosq.f32 %v118_v38  ;;  %vm232_vm13 = vcmp.eq.s32.totalorder %v1455_v58, 2  ;;  %v318_v18 = vand.u32 2147483647, %v317_v1  ;;  %vm125_vm14 = vcmp.lt.s32.totalorder %v1464_v50, 2 }
  0x59   :  { %1213 = vsinq.f32 %v118_v38  ;;  %vm228_vm15 = vcmp.lt.s32.totalorder %v1455_v58, 2  ;;  %v1481_v21 = vand.u32 3, %v331_v52  ;;  %v1483_v39 = vand.u32 3, %v327_v62 }
  0x5a   :  { %vm448_vm0 = vcmp.lt.s32.totalorder %v1292_v7, 0  ;;  %v508_v11 = vshrl.u32 %v507_v19, 30  ;;  %v865_v22 = vand.u32 2139095040, %v1384_v17  ;;  %vm122_vm2 = vweird.f32 %v1284_v3 }
  0x5b   :  { %v321_v23 = vmul.f32 %v320_v9, %v318_v18  ;;  %v1489_v24 = vadd.s32 %v1445_v40, %v1452_v49  ;;  %v1491_v25 = vshrl.u32 %v666_v45, 5  ;;  %v1493_v10 = vshll.u32 %v662_v26, 8 }
  0x5c   :  { %v509_v28 = vshll.u32 %v508_v11, 30  ;;  %v671_v4 = vshll.u32 %v1256_v29, %v668_v8  ;;  %v672_v30 = vshrl.u32 %v1257_v31, %v669_v20  ;;  %v674_v32 = vshll.u32 %v1257_v31, %v668_v8 }
  0x5d   :  { %v322_v34 = vxor.u32 2147483648, %v321_v23  ;;  %v675_v42 = vshrl.u32 %v1258_v33, %v669_v20  ;;  %v677_v43 = vshll.u32 %v1258_v33, %v668_v8  ;;  %v678_v12 = vshrl.u32 %v1259_v35, %v669_v20 }
  0x5e   :  { %vm29_vm3 = vcmp.lt.s32.totalorder %v1473_v15, 4  ;;  %v1502_v40 = vsub.s32 %v506_v5, %v509_v28  ;;  %v680_v47 = vshll.u32 %v1259_v35, %v668_v8  ;;  %v681_v48 = vshrl.u32 %v1260_v37, %v669_v20 }
  0x5f   :  { %v1506_v27 = vshrl.u32 %v865_v22, 23  ;;  %v323_v36 = vsel %vm240_vm1, %v322_v34, %v321_v23  ;;  %v532_v49 = vsub.s32 4, %v508_v11  ;;  %v683_v53 = vshll.u32 %v1260_v37, %v668_v8 }
  0x60   :  { %v684_v54 = vshrl.u32 %v1261_v44, %v669_v20  ;;  %v326_v57 = vsel %vm1429_vm6, %v1289_v6, %v323_v36  ;;  %v512_v55 = vsub.s32 0, %v1502_v40  ;;  %v670_v59 = vshrl.u32 %v1256_v29, %v669_v20 }
  0x61   :  { %v673_v41 = vor.u32 %v672_v30, %v671_v4  ;;  %1215 = vcosq.f32 %v326_v57  ;;  %v676_v62 = vor.u32 %v675_v42, %v674_v32  ;;  %v679_v63 = vor.u32 %v678_v12, %v677_v43 }
  0x62   :  { %v1212_v56 = vpop.eup %1211  ;;  %1217 = vsinq.f32 %v326_v57  ;;  %v1160_v38 = vmin.u32 %v512_v55, %v1502_v40  ;;  %v682_v0 = vor.u32 %v681_v48, %v680_v47  ;;  %vm337_vm1 = vcmp.eq.s32.totalorder %v1481_v21, 2 }
  0x63   :  { %v1214_v13 = vpop.eup %1213  ;;  %v130_v60 = vxor.u32 2147483648, %v1212_v56  ;;  %vm440_vm4 = vcmp.eq.s32.totalorder %v1483_v39, 2  ;;  %v1526_v46 = vsel %vm448_vm0, %v532_v49, %v508_v11  ;;  %v685_v52 = vor.u32 %v684_v54, %v683_v53 }
  0x64   :  { %v127_v45 = vxor.u32 2147483648, %v1214_v13  ;;  %vm334_vm5 = vcmp.eq.s32.totalorder %v1481_v21, 0  ;;  %vm437_vm6 = vcmp.eq.s32.totalorder %v1483_v39, 0  ;;  %v514_v1 = vclz %v1160_v38 }
  0x65   :  { %v131_v61 = vsel %vm129_vm11, %v130_v60, %v1214_v13  ;;  %v234_v14 = vsel %vm232_vm13, %v130_v60, %v1214_v13  ;;  %vm689_vm7 = vcmp.lt.s32.totalorder %v1491_v25, 4  ;;  %vm333_vm8 = vcmp.lt.s32.totalorder %v1481_v21, 2 }
  0x66   :  { %v128_v5 = vsel %vm126_vm10, %v1212_v56, %v127_v45  ;;  %v231_v8 = vsel %vm229_vm12, %v1212_v56, %v127_v45  ;;  %vm436_vm9 = vcmp.lt.s32.totalorder %v1483_v39, 2  ;;  %vm686_vm10 = vcmp.lt.s32.totalorder %v1491_v25, 1 }
  0x67   :  { %v132_v9 = vsel %vm125_vm14, %v128_v5, %v131_v61  ;;  %v235_v26 = vsel %vm228_vm15, %v231_v8, %v234_v14  ;;  %v691_v19 = vsel %vm689_vm7, %v679_v63, 2102212464  ;;  %vm330_vm11 = vweird.f32 %v1289_v6 }
  0x68   :  { %v133_v20 = vsel %vm122_vm2, nan, %v132_v9  ;;  %v236_v18 = vsel %vm122_vm2, nan, %v235_v26  ;;  %v1161_v50 = vadd.s32 4294967294, %v514_v1  ;;  %vm688_vm12 = vcmp.lt.s32.totalorder %v1491_v25, 3 }
  0x69   :  { %v1069_v58 = vrot.slane %v133_v20, 4  ;;  %v1071_v11 = vsel %vm29_vm3, %v236_v18, %v133_v20  ;;  %vm687_vm13 = vcmp.lt.s32.totalorder %v1491_v25, 2  ;;  %v690_v22 = vsel %vm686_vm10, %v670_v59, %v673_v41 }
  0x6a   :  { %vm1162_vm14 = vcmp.lt.s32.totalorder %v1161_v50, 0  ;;  %v692_v23 = vsel %vm688_vm12, %v676_v62, %v691_v19  ;;  %v694_v28 = vsel %vm686_vm10, %v673_v41, %v676_v62  ;;  %v695_v4 = vsel %vm689_vm7, %v682_v0, 920167782 }
  0x6b   :  { %v1070_v30 = vsel %vm29_vm3, %v1284_v3, %v1069_v58  ;;  %v517_v32 = vsel %vm1162_vm14, 0, %v1161_v50  ;;  %v696_v34 = vsel %vm688_vm12, %v679_v63, %v695_v4  ;;  %v698_v42 = vsel %vm686_vm10, %v676_v62, %v679_v63  ;;  %v1216_v36 = vpop.eup %1215 }
  0x6c   :  { %1089 = vxpose.xlu0.b32.start [1/11] (short) %v1070_v30, 128  ;;  %v518_v43 = vsub.s32 32, %v517_v32  ;;  %v519_v12 = vshll.u32 %v1502_v40, %v517_v32  ;;  %v522_v47 = vsub.s32 4294967266, %v517_v32  ;;  %v697_v48 = vsel %vm687_vm13, %v694_v28, %v696_v34  ;;  %v1218_v56 = vpop.eup %1217 }
  0x6d   :  { %v1072_v49 = vrot.slane %v236_v18, 4  ;;  %v699_v3 = vsel %vm689_vm7, %v685_v52, 1326507024  ;;  %v1574_v53 = vmul.u32.u64.low %v1493_v10, %v697_v48  ;;  %v1575_v54 = vmul.u32.u64.high %v1493_v10, %v697_v48, %v1574_v53 }
  0x6e   :  { %v338_v57 = vxor.u32 2147483648, %v1216_v36  ;;  %v520_v55 = vshrl.u32 %v1489_v24, %v518_v43  ;;  %v523_v59 = vadd.s32 127, %v522_v47  ;;  %v700_v40 = vsel %vm688_vm12, %v682_v0, %v699_v3 }
  0x6f   :  { %v335_v41 = vxor.u32 2147483648, %v1218_v56  ;;  %v693_v13 = vsel %vm687_vm13, %v690_v22, %v692_v23  ;;  %v701_v60 = vsel %vm687_vm13, %v698_v42, %v700_v40  ;;  %v1175_v62 = vadd.s32 4294967169, %v1506_v27 }
  0x70   :  { %1090 = vxpose.xlu0.b32.cont [2/11] (short) %v1071_v11, 128  ;;  %v339_v63 = vsel %vm337_vm1, %v338_v57, %v1218_v56  ;;  %v442_v24 = vsel %vm440_vm4, %v338_v57, %v1218_v56  ;;  %v521_v45 = vor.u32 %v520_v55, %v519_v12  ;;  %v524_v38 = vshll.u32 %v523_v59, 23 }
  0x71   :  { %v336_v0 = vsel %vm334_vm5, %v1216_v36, %v335_v41  ;;  %v439_v61 = vsel %vm437_vm6, %v1216_v36, %v335_v41  ;;  %v1595_v25 = vmul.u32.u64.low %v1493_v10, %v701_v60  ;;  %v1596_v14 = vmul.u32.u64.high %v1493_v10, %v701_v60, %v1595_v25 }
  0x72   :  { %v340_v27 = vsel %vm333_vm8, %v336_v0, %v339_v63  ;;  %v443_v52 = vsel %vm436_vm9, %v439_v61, %v442_v24  ;;  %v525_v5 = vor.u32 4788187, %v524_v38  ;;  %v528_v8 = vcvt.s32.f32 %v521_v45 }
  0x73   :  { %v341_v1 = vsel %vm330_vm11, nan, %v340_v27  ;;  %v709_v9 = vmul.u32 %v1493_v10, %v693_v13  ;;  %v712_v26 = vadd.s32 1, %v1575_v54  ;;  %vm1608_vm15 = vcmp.le.f32.partialorder %v446_v51, 0.7853982 }
  0x74   :  { %v1073_v19 = vrot.slane %v341_v1, 4  ;;  %v526_v21 = vand.u32 2147483647, %v525_v5  ;;  %v1614_v39 = vsel %vm330_vm11, nan, %v443_v52  ;;  %v535_v18 = vsel %vm1608_vm15, 0, %v1526_v46 }
  0x75   :  { %vm711_vm2 = vc.u32 %v1596_v14, %v1574_v53  ;;  %v872_v10 = vadd.s32 1, %v1175_v62  ;;  %v1075_v6 = vsel %vm29_vm3, %v1614_v39, %v341_v1  ;;  %v539_v23 = vadd.s32 3, %v535_v18 }
  0x76   :  { %v1074_v50 = vsel %vm29_vm3, %v1072_v49, %v1073_v19  ;;  %v529_v51 = vmul.f32 %v528_v8, %v526_v21  ;;  %v713_v58 = vsel %vm711_vm2, %v712_v26, %v1575_v54  ;;  %v862_v4 = vand.u32 2147483647, %v1384_v17 }
  0x77   :  { %1091 = vxpose.xlu0.b32.cont [3/11] (short) %v1074_v50, 128  ;;  %v714_v11 = vadd.s32 %v713_v58, %v709_v9  ;;  %vm873_vm1 = vcmp.gt.s32.totalorder %v872_v10, 0  ;;  %v1635_v12 = vand.u32 3, %v539_v23  ;;  %v1637_v47 = vand.u32 3, %v535_v18 }
  0x78   :  { %v530_v22 = vxor.u32 2147483648, %v529_v51  ;;  %v874_v46 = vsel %vm873_vm1, %v872_v10, 0  ;;  %v869_v36 = vand.u32 8388607, %v862_v4  ;;  %vm538_vm5 = vweird.f32 %v1292_v7 }
  0x79   :  { %v715_v28 = vadd.s32 536870912, %v714_v11  ;;  %v876_v30 = vand.u32 31, %v874_v46  ;;  %vm645_vm4 = vcmp.eq.s32.totalorder %v1637_v47, 0  ;;  %v875_v13 = vshrl.u32 %v874_v46, 5 }
  0x7a   :  { %v531_v32 = vsel %vm448_vm0, %v530_v22, %v529_v51  ;;  %vm644_vm0 = vcmp.lt.s32.totalorder %v1637_v47, 2  ;;  %vm541_vm6 = vcmp.lt.s32.totalorder %v1635_v12, 2  ;;  %vm542_vm7 = vcmp.eq.s32.totalorder %v1635_v12, 0 }
  0x7b   :  { %1092 = vxpose.xlu0.b32.cont [4/11] (short) %v1075_v6, 128  ;;  %v534_v34 = vsel %vm1608_vm15, %v1292_v7, %v531_v32  ;;  %v1633_v42 = vshrl.u32 %v715_v28, 30  ;;  %v877_v43 = vsub.s32 32, %v876_v30  ;;  %v882_v49 = vshll.u32 %v1257_v31, %v876_v30 }
  0x7c   :  { %1219 = vcosq.f32 %v534_v34  ;;  %v885_v54 = vshll.u32 %v1258_v33, %v876_v30  ;;  %v888_v56 = vshll.u32 %v1259_v35, %v876_v30  ;;  %v891_v40 = vshll.u32 %v1260_v37, %v876_v30 }
  0x7d   :  { %1221 = vsinq.f32 %v534_v34  ;;  %v717_v48 = vshll.u32 %v1633_v42, 30  ;;  %v883_v3 = vshrl.u32 %v1258_v33, %v877_v43  ;;  %v889_v57 = vshrl.u32 %v1260_v37, %v877_v43 }
  0x7e   :  { %v886_v59 = vshrl.u32 %v1259_v35, %v877_v43  ;;  %v892_v41 = vshrl.u32 %v1261_v44, %v877_v43  ;;  %v879_v60 = vshll.u32 %v1256_v29, %v876_v30  ;;  %v880_v33 = vshrl.u32 %v1257_v31, %v877_v43 }
  0x7f   :  { %v1647_v55 = vsub.s32 %v714_v11, %v717_v48  ;;  %v870_v37 = vor.u32 8388608, %v869_v36  ;;  %vm545_vm8 = vcmp.eq.s32.totalorder %v1635_v12, 2  ;;  %vm648_vm9 = vcmp.eq.s32.totalorder %v1637_v47, 2 }
  0x80   :  { %v890_v44 = vor.u32 %v889_v57, %v888_v56  ;;  %v893_v62 = vor.u32 %v892_v41, %v891_v40  ;;  %v878_v24 = vshrl.u32 %v1256_v29, %v877_v43  ;;  %v884_v31 = vor.u32 %v883_v3, %v882_v49 }
  0x81   :  { %v720_v35 = vsub.s32 0, %v1647_v55  ;;  %v887_v45 = vor.u32 %v886_v59, %v885_v54  ;;  %v1076_v38 = vrot.slane %v1614_v39, 4  ;;  %v881_v0 = vor.u32 %v880_v33, %v879_v60 }
  0x82   :  { %vm894_vm10 = vcmp.lt.s32.totalorder %v875_v13, 1  ;;  %vm897_vm11 = vcmp.lt.s32.totalorder %v875_v13, 4  ;;  %vm895_vm12 = vcmp.lt.s32.totalorder %v875_v13, 2  ;;  %vm896_vm13 = vcmp.lt.s32.totalorder %v875_v13, 3 }
  0x83   :  { %v1168_v63 = vmin.u32 %v720_v35, %v1647_v55  ;;  %v910_v25 = vshll.u32 %v870_v37, 8  ;;  %v710_v52 = vadd.s32 %v1574_v53, %v1596_v14  ;;  %v899_v5 = vsel %vm897_vm11, %v887_v45, 2102212464 }
  0x84   :  { %v903_v8 = vsel %vm897_vm11, %v890_v44, 920167782  ;;  %v907_v1 = vsel %vm897_vm11, %v893_v62, 1326507024  ;;  %v898_v19 = vsel %vm894_vm10, %v878_v24, %v881_v0  ;;  %v906_v20 = vsel %vm894_vm10, %v884_v31, %v887_v45 }
  0x85   :  { %v722_v61 = vclz %v1168_v63  ;;  %v900_v39 = vsel %vm896_vm13, %v884_v31, %v899_v5  ;;  %v902_v18 = vsel %vm894_vm10, %v881_v0, %v884_v31  ;;  %v908_v10 = vsel %vm896_vm13, %v890_v44, %v907_v1 }
  0x86   :  { %v1220_v27 = vpop.eup %1219  ;;  %v904_v50 = vsel %vm896_vm13, %v887_v45, %v903_v8  ;;  %v909_v6 = vsel %vm895_vm12, %v906_v20, %v908_v10  ;;  %v901_v36 = vsel %vm895_vm12, %v898_v19, %v900_v39  ;;  %v740_v35 = vsub.s32 4, %v1633_v42 }
  0x87   :  { %v1222_v9 = vpop.eup %1221  ;;  %v546_v29 = vxor.u32 2147483648, %v1220_v27  ;;  %v1169_v26 = vadd.s32 4294967294, %v722_v61  ;;  %v905_v34 = vsel %vm895_vm12, %v902_v18, %v904_v50  ;;  %v917_v13 = vmul.u32 %v910_v25, %v901_v36 }
  0x88   :  { %v543_v21 = vxor.u32 2147483648, %v1222_v9  ;;  %v1695_v47 = vmul.u32.u64.low %v910_v25, %v909_v6  ;;  %v1696_v3 = vmul.u32.u64.high %v910_v25, %v909_v6, %v1695_v47  ;;  %vm656_vm2 = vcmp.lt.s32.totalorder %v1377_v2, 0 }
  0x89   :  { %v547_v53 = vsel %vm545_vm8, %v546_v29, %v1222_v9  ;;  %v650_v14 = vsel %vm648_vm9, %v546_v29, %v1222_v9  ;;  %vm1170_vm14 = vcmp.lt.s32.totalorder %v1169_v26, 0  ;;  %vm655_vm1 = vcmp.le.f32.partialorder %v654_v16, 0.7853982 }
  0x8a   :  { %v544_v51 = vsel %vm542_vm7, %v1220_v27, %v543_v21  ;;  %v647_v58 = vsel %vm645_vm4, %v1220_v27, %v543_v21  ;;  %v725_v11 = vsel %vm1170_vm14, 0, %v1169_v26  ;;  %v741_v24 = vsel %vm656_vm2, %v740_v35, %v1633_v42 }
  0x8b   :  { %v548_v22 = vsel %vm541_vm6, %v544_v51, %v547_v53  ;;  %v651_v23 = vsel %vm644_vm0, %v647_v58, %v650_v14  ;;  %v726_v46 = vsub.s32 32, %v725_v11  ;;  %v727_v28 = vshll.u32 %v1647_v55, %v725_v11 }
  0x8c   :  { %v549_v30 = vsel %vm538_vm5, nan, %v548_v22  ;;  %v730_v32 = vsub.s32 4294967266, %v725_v11  ;;  %v1693_v12 = vsel %vm538_vm5, nan, %v651_v23  ;;  %v743_v61 = vsel %vm655_vm1, 0, %v741_v24 }
  0x8d   :  { %v1077_v43 = vrot.slane %v549_v30, 4  ;;  %v728_v48 = vshrl.u32 %v710_v52, %v726_v46  ;;  %v1700_v57 = vmul.u32.u64.low %v910_v25, %v905_v34  ;;  %v1701_v55 = vmul.u32.u64.high %v910_v25, %v905_v34, %v1700_v57 }
  0x8e   :  { %v731_v49 = vadd.s32 127, %v730_v32  ;;  %v1079_v40 = vsel %vm29_vm3, %v1693_v12, %v549_v30  ;;  %v747_v27 = vadd.s32 3, %v743_v61  ;;  %v851_v1 = vand.u32 3, %v743_v61 }
  0x8f   :  { %v1078_v54 = vsel %vm29_vm3, %v1076_v38, %v1077_v43  ;;  %v729_v56 = vor.u32 %v728_v48, %v727_v28  ;;  %vm919_vm15 = vc.u32 %v1696_v3, %v1700_v57  ;;  %v920_v60 = vadd.s32 1, %v1701_v55 }
  0x90   :  { %1093 = vxpose.xlu0.b32.cont [5/11] (short) %v1078_v54, 128  ;;  %v732_v59 = vshll.u32 %v731_v49, 23  ;;  %v748_v8 = vand.u32 3, %v747_v27  ;;  %vm856_vm4 = vcmp.eq.s32.totalorder %v851_v1, 2  ;;  %vm852_vm6 = vcmp.lt.s32.totalorder %v851_v1, 2 }
  0x91   :  { %v736_v41 = vcvt.s32.f32 %v729_v56  ;;  %v921_v37 = vsel %vm919_vm15, %v920_v60, %v1701_v55  ;;  %vm853_vm7 = vcmp.eq.s32.totalorder %v851_v1, 0  ;;  %v918_v21 = vadd.s32 %v1700_v57, %v1696_v3 }
  0x92   :  { %v733_v7 = vor.u32 4788187, %v732_v59  ;;  %v922_v62 = vadd.s32 %v921_v37, %v917_v13  ;;  %vm753_vm0 = vcmp.eq.s32.totalorder %v748_v8, 2  ;;  %vm750_vm5 = vcmp.eq.s32.totalorder %v748_v8, 0 }
  0x93   :  { %vm749_vm8 = vcmp.lt.s32.totalorder %v748_v8, 2  ;;  %vm746_vm10 = vweird.f32 %v1377_v2  ;;  %v1080_v58 = vrot.slane %v1693_v12, 4  ;;  %vm864_vm11 = vcmp.lt.s32.totalorder %v1384_v17, 0 }
  0x94   :  { %1094 = vxpose.xlu0.b32.cont [6/11] (short) %v1079_v40, 128  ;;  %v734_v33 = vand.u32 2147483647, %v733_v7  ;;  %v923_v31 = vadd.s32 536870912, %v922_v62  ;;  %vm863_vm12 = vcmp.le.f32.partialorder %v862_v4, 0.7853982 }
  0x96   :  { %v737_v44 = vmul.f32 %v736_v41, %v734_v33  ;;  %v924_v38 = vshrl.u32 %v923_v31, 30 }
  0x98   :  { %v738_v63 = vxor.u32 2147483648, %v737_v44  ;;  %v925_v25 = vshll.u32 %v924_v38, 30  ;;  %v948_v3 = vsub.s32 4, %v924_v38 }
  0x9a   :  { %v739_v45 = vsel %vm656_vm2, %v738_v63, %v737_v44  ;;  %v926_v52 = vsub.s32 %v922_v62, %v925_v25  ;;  %v949_v56 = vsel %vm864_vm11, %v948_v3, %v924_v38 }
  0x9b   :  { %v742_v0 = vsel %vm655_vm1, %v1377_v2, %v739_v45  ;;  %v951_v59 = vsel %vm863_vm12, 0, %v949_v56 }
  0x9c   :  { %1223 = vcosq.f32 %v742_v0  ;;  %v928_v5 = vsub.s32 0, %v926_v52  ;;  %v955_v40 = vadd.s32 3, %v951_v59  ;;  %v1059_v41 = vand.u32 3, %v951_v59 }
  0x9d   :  { %1225 = vsinq.f32 %v742_v0 }
  0x9e   :  { %v1176_v9 = vmin.u32 %v928_v5, %v926_v52  ;;  %v956_v7 = vand.u32 3, %v955_v40  ;;  %vm1064_vm14 = vcmp.eq.s32.totalorder %v1059_v41, 2  ;;  %vm1061_vm2 = vcmp.eq.s32.totalorder %v1059_v41, 0 }
  0xa0   :  { %v930_v29 = vclz %v1176_v9  ;;  %vm961_vm13 = vcmp.eq.s32.totalorder %v956_v7, 2  ;;  %vm958_vm15 = vcmp.eq.s32.totalorder %v956_v7, 0  ;;  %vm957_vm1 = vcmp.lt.s32.totalorder %v956_v7, 2 }
  0xa2   :  { %v1177_v42 = vadd.s32 4294967294, %v930_v29 }
  0xa4   :  { %vm1178_vm9 = vcmp.lt.s32.totalorder %v1177_v42, 0 }
  0xa5   :  { %v933_v10 = vsel %vm1178_vm9, 0, %v1177_v42 }
  0xa6   :  { %v1224_v16 = vpop.eup %1223  ;;  %v934_v50 = vsub.s32 32, %v933_v10  ;;  %v935_v51 = vshll.u32 %v926_v52, %v933_v10  ;;  %v938_v22 = vsub.s32 4294967266, %v933_v10 }
  0xa7   :  { %v1226_v26 = vpop.eup %1225  ;;  %v754_v19 = vxor.u32 2147483648, %v1224_v16 }
  0xa8   :  { %v751_v20 = vxor.u32 2147483648, %v1226_v26  ;;  %v936_v46 = vshrl.u32 %v918_v21, %v934_v50  ;;  %v939_v30 = vadd.s32 127, %v938_v22 }
  0xa9   :  { %v755_v39 = vsel %vm753_vm0, %v754_v19, %v1226_v26  ;;  %v858_v18 = vsel %vm856_vm4, %v754_v19, %v1226_v26  ;;  %vm1060_vm0 = vcmp.lt.s32.totalorder %v1059_v41, 2  ;;  %vm954_vm4 = vweird.f32 %v1384_v17 }
  0xaa   :  { %v752_v53 = vsel %vm750_vm5, %v1224_v16, %v751_v20  ;;  %v855_v14 = vsel %vm853_vm7, %v1224_v16, %v751_v20  ;;  %v937_v34 = vor.u32 %v936_v46, %v935_v51  ;;  %v940_v48 = vshll.u32 %v939_v30, 23 }
  0xab   :  { %v756_v11 = vsel %vm749_vm8, %v752_v53, %v755_v39  ;;  %v859_v6 = vsel %vm852_vm6, %v855_v14, %v858_v18  ;;  %vm1121_vm5 = vcmask 687104  }
  0xac   :  { %v757_v23 = vsel %vm746_vm10, nan, %v756_v11  ;;  %v860_v32 = vsel %vm746_vm10, nan, %v859_v6  ;;  %v941_v12 = vor.u32 4788187, %v940_v48  ;;  %v944_v49 = vcvt.s32.f32 %v937_v34 }
  0xad   :  { %v1081_v28 = vrot.slane %v757_v23, 4  ;;  %v1083_v36 = vsel %vm29_vm3, %v860_v32, %v757_v23  ;;  %v1084_v63 = vrot.slane %v860_v32, 4 }
  0xae   :  { %v942_v47 = vand.u32 2147483647, %v941_v12 }
  0xaf   :  { %v1082_v43 = vsel %vm29_vm3, %v1080_v58, %v1081_v28 }
  0xb0   :  { %1095 = vxpose.xlu0.b32.cont [7/11] (short) %v1082_v43, 128  ;;  %v945_v54 = vmul.f32 %v944_v49, %v942_v47 }
  0xb2   :  { %v946_v2 = vxor.u32 2147483648, %v945_v54 }
  0xb4   :  { %1096 = vxpose.xlu0.b32.cont [8/11] (short) %v1083_v36, 128  ;;  %v947_v57 = vsel %vm864_vm11, %v946_v2, %v945_v54 }
  0xb5   :  { %v950_v55 = vsel %vm863_vm12, %v1384_v17, %v947_v57 }
  0xb6   :  { %1227 = vcosq.f32 %v950_v55 }
  0xb7   :  { %1229 = vsinq.f32 %v950_v55 }
  0xc0   :  { %v1228_v13 = vpop.eup %1227 }
  0xc1   :  { %v1230_v60 = vpop.eup %1229  ;;  %v962_v33 = vxor.u32 2147483648, %v1228_v13 }
  0xc2   :  { %v959_v4 = vxor.u32 2147483648, %v1230_v60 }
  0xc3   :  { %v963_v35 = vsel %vm961_vm13, %v962_v33, %v1230_v60  ;;  %v1066_v37 = vsel %vm1064_vm14, %v962_v33, %v1230_v60 }
  0xc4   :  { %v960_v44 = vsel %vm958_vm15, %v1228_v13, %v959_v4  ;;  %v1063_v62 = vsel %vm1061_vm2, %v1228_v13, %v959_v4 }
  0xc5   :  { %v964_v24 = vsel %vm957_vm1, %v960_v44, %v963_v35  ;;  %v1067_v31 = vsel %vm1060_vm0, %v1063_v62, %v1066_v37 }
  0xc6   :  { %v965_v45 = vsel %vm954_vm4, nan, %v964_v24  ;;  %v1068_v0 = vsel %vm954_vm4, nan, %v1067_v31 }
  0xc7   :  { %v1085_v38 = vrot.slane %v965_v45, 4  ;;  %v1087_v25 = vsel %vm29_vm3, %v1068_v0, %v965_v45  ;;  %v1088_v27 = vrot.slane %v1068_v0, 4 }
  0xc9   :  { %v1086_v61 = vsel %vm29_vm3, %v1084_v63, %v1085_v38 }
  0xca   :  { %1097 = vxpose.xlu0.b32.cont [9/11] (short) %v1086_v61, 128 }
  0xce   :  { %1098 = vxpose.xlu0.b32.cont [10/11] (short) %v1087_v25, 128 }
  0xd2   :  { %1099 = vxpose.xlu0.b32.end [11/11] (short) %v1088_v27, 128 }
 0x12a   :  { %v1105_v17 = vpop.trf.xlu0 }
 0x12b   :  { %1122 = vst.msk [vmem:[%s1801_s1] sm:$0xff] %vm1121_vm5, %v1105_v17 }
 0x12e   :  { %v1106_v52 = vpop.trf.xlu0 }
 0x12f   :  { %1123 = vst.msk [vmem:[%s1801_s1 + $0x8] sm:$0xff] %vm1121_vm5, %v1106_v52 }
 0x132   :  { %v1107_v5 = vpop.trf.xlu0 }
 0x133   :  { %1124 = vst.msk [vmem:[%s1801_s1 + $0x10] sm:$0xff] %vm1121_vm5, %v1107_v5 }
 0x136   :  { %v1108_v15 = vpop.trf.xlu0 }
 0x137   :  { %1125 = vst.msk [vmem:[%s1801_s1 + $0x18] sm:$0xff] %vm1121_vm5, %v1108_v15 }
 0x13a   :  { %v1109_v8 = vpop.trf.xlu0 }
 0x13b   :  { %1126 = vst.msk [vmem:[%s1801_s1 + $0x20] sm:$0xff] %vm1121_vm5, %v1109_v8 }
 0x13e   :  { %v1110_v1 = vpop.trf.xlu0 }
 0x13f   :  { %1127 = vst.msk [vmem:[%s1801_s1 + $0x28] sm:$0xff] %vm1121_vm5, %v1110_v1 }
 0x142   :  { %v1111_v9 = vpop.trf.xlu0 }
 0x143   :  { %1128 = vst.msk [vmem:[%s1801_s1 + $0x30] sm:$0xff] %vm1121_vm5, %v1111_v9 }
 0x146   :  { %v1112_v29 = vpop.trf.xlu0 }
 0x147   :  { %1129 = vst.msk [vmem:[%s1801_s1 + $0x38] sm:$0xff] %vm1121_vm5, %v1112_v29 }
 0x14a   :  { %v1113_v16 = vpop.trf.xlu0 }
 0x14b   :  { %1130 = vst.msk [vmem:[%s1801_s1 + $0x40] sm:$0xff] %vm1121_vm5, %v1113_v16 }
 0x14e   :  { %v1114_v42 = vpop.trf.xlu0 }
 0x14f   :  { %1131 = vst.msk [vmem:[%s1801_s1 + $0x48] sm:$0xff] %vm1121_vm5, %v1114_v42 }
 0x152   :  { %v1115_v26 = vpop.trf.xlu0 }
 0x153   :  { %1132 = vst.msk [vmem:[%s1801_s1 + $0x50] sm:$0xff] %vm1121_vm5, %v1115_v26 }
 0x156   :  { %v1116_v19 = vpop.trf.xlu0 }
 0x157   :  { %1133 = vst.msk [vmem:[%s1801_s1 + $0x58] sm:$0xff] %vm1121_vm5, %v1116_v19 }
 0x15a   :  { %v1117_v20 = vpop.trf.xlu0 }
 0x15b   :  { %1134 = vst.msk [vmem:[%s1801_s1 + $0x60] sm:$0xff] %vm1121_vm5, %v1117_v20 }
 0x15e   :  { %v1118_v21 = vpop.trf.xlu0 }
 0x15f   :  { %1135 = vst.msk [vmem:[%s1801_s1 + $0x68] sm:$0xff] %vm1121_vm5, %v1118_v21 }
 0x162   :  { %v1119_v39 = vpop.trf.xlu0 }
 0x163   :  { %1136 = vst.msk [vmem:[%s1801_s1 + $0x70] sm:$0xff] %vm1121_vm5, %v1119_v39 }
 0x166   :  { %v1120_v18 = vpop.trf.xlu0 }
 0x167   :  { %1137 = vst.msk [vmem:[%s1801_s1 + $0x78] sm:$0xff] %vm1121_vm5, %v1120_v18 }
 0x168   :  { %1142 = vsyncpa [#allocation3], 1 }

</bundles_post_ra>
